<compile_context>
chip_gen: v5e
topology: v5e:2x2
jax: 0.10.0
libtpu: 0.0.40
codegen_flags: <defaults>
</compile_context>

<pallas_src>
import jax
import jax.numpy as jnp
from jax import lax
from jax.experimental import pallas as pl
from jax.experimental.pallas import tpu as pltpu


_VMEM_LIMIT_BYTES = 32 * 1024 * 1024   # scoped limit, safe on v5e/v6e/v7x
_VMEM_BUDGET_BYTES = 20 * 1024 * 1024  # target for live (double-buffered) tiles
_MAX_TILE_N = 4096


def _embedding_onehot_kernel(idx_ref, table3_ref, out_ref):
    # idx_ref:    (TILE_N, 1)               int32
    # table3_ref: (3*n_datasets, hidden)    bfloat16 (hi/mid/lo stacked; resident)
    # out_ref:    (TILE_N, hidden)          float32
    tile_n = idx_ref.shape[0]
    n3 = table3_ref.shape[0]
    nd = n3 // 3

    idx = idx_ref[...]                                           # (TILE_N, 1)
    iota = lax.broadcasted_iota(jnp.int32, (tile_n, n3), 1)      # lane iota
    # "Three-hot": ones at columns idx, idx+nd, idx+2*nd.  The single bf16 dot
    # below then sums hi+mid+lo rows in the MXU's f32 accumulator, which
    # reconstructs the original f32 row exactly (3 x 8 mantissa bits = 24).
    sel = (iota == idx) | (iota == idx + nd) | (iota == idx + 2 * nd)
    onehot3 = sel.astype(table3_ref.dtype)                       # (TILE_N, 3*nd)

    out = jnp.dot(onehot3, table3_ref[...], preferred_element_type=jnp.float32)
    out_ref[...] = out.astype(out_ref.dtype)


def _round_down(a, b):
    return (a // b) * b


def _choose_tile_n(n_tokens, hidden, n3):
    """VMEM-budget-aware token tile (multiple of 8; of 256 when large)."""
    per_token = 2 * hidden * 4          # f32 output tile, double-buffered
    per_token += 2 * 128 * 4            # (TILE_N, 1) int32 idx lane-pads to 128, x2 bufs
    per_token += max(n3, 128) * 2       # bf16 three-hot intermediate (1 copy)
    table_bytes = 2 * n3 * hidden * 2   # resident bf16 table, x2 bufs
    avail = max(_VMEM_BUDGET_BYTES - table_bytes, 8 * per_token)

    tile = min(avail // per_token, _MAX_TILE_N)
    if tile >= 256:
        tile = _round_down(tile, 256)
    else:
        tile = max(_round_down(tile, 8), 8)

    # Never let the block exceed the token extent of the (unpadded) output.
    max_full = _round_down(n_tokens, 8)
    if max_full >= 8:
        tile = max(min(tile, max_full), 8)
    else:
        tile = n_tokens  # < 8 tokens: single block equal to the full dim
    return int(tile)


@jax.jit
def positional_embedding_trainable(x, table):
    """Pallas equivalent of `self.pe(x)` with pe = nn.Embedding(n_datasets, hidden_dim)."""
    orig_shape = x.shape
    n_datasets, hidden = table.shape

    # Exact 3-term bf16 split of the f32 table: hi + mid + lo reconstructs f32.
    t32 = table.astype(jnp.float32)
    hi = t32.astype(jnp.bfloat16)
    r1 = t32 - hi.astype(jnp.float32)
    mid = r1.astype(jnp.bfloat16)
    lo = (r1 - mid.astype(jnp.float32)).astype(jnp.bfloat16)
    table3 = jnp.concatenate([hi, mid, lo], axis=0)              # (3*nd, hidden)
    n3 = 3 * n_datasets

    idx = x.reshape(-1).astype(jnp.int32)
    # NOTE: PyTorch nn.Embedding raises on out-of-range indices; here an OOB
    # index produces an all-zero output row (memory-safe, no silent remap).
    n_tokens = idx.shape[0]

    tile_n = _choose_tile_n(n_tokens, hidden, n3)
    num_tiles = pl.cdiv(n_tokens, tile_n)
    n_padded = num_tiles * tile_n
    idx_padded = jnp.pad(idx, (0, n_padded - n_tokens)).reshape(n_padded, 1)

    out = pl.pallas_call(
        _embedding_onehot_kernel,
        out_shape=jax.ShapeDtypeStruct((n_tokens, hidden), table.dtype),
        grid_spec=pltpu.PrefetchScalarGridSpec(
            num_scalar_prefetch=0,
            grid=(num_tiles,),
            in_specs=[
                # (TILE_N, 1) int32 index column per grid step (always full:
                # the index array is padded to num_tiles * tile_n rows).
                pl.BlockSpec((tile_n, 1), lambda i: (i, 0)),
                # Full stacked bf16 table, constant block -> resident.
                pl.BlockSpec((n3, hidden), lambda i: (0, 0)),
            ],
            # Output sized exactly n_tokens: the ragged last block (if any) is
            # masked on writeback by Pallas -> no post-call slice / extra HBM
            # round trip.
            out_specs=pl.BlockSpec((tile_n, hidden), lambda i: (i, 0)),
        ),
        compiler_params=pltpu.CompilerParams(
            dimension_semantics=("parallel",),
            vmem_limit_bytes=_VMEM_LIMIT_BYTES,
        ),
    )(idx_padded, table3)

    return out.reshape(*orig_shape, hidden)


if __name__ == "__main__":
    # Synthetic config (mirrors config.n_datasets / config.hidden_dim).
    n_datasets = 16
    hidden_dim = 128
    batch, seq = 2, 8

    key = jax.random.PRNGKey(0)
    k_table, k_idx, k_idx2, k_idx3 = jax.random.split(key, 4)

    # Deterministic "trainable" embedding table (nn.Embedding weight shape).
    pe_weight = jax.random.normal(k_table, (n_datasets, hidden_dim), dtype=jnp.float32)

    # 1) Small case (single block, no padding).
    x = jax.random.randint(k_idx, (batch, seq), 0, n_datasets, dtype=jnp.int32)
    out = jax.block_until_ready(positional_embedding_trainable(x, pe_weight))
    ref = jnp.take(pe_weight, x, axis=0)
    assert out.shape == (batch, seq, hidden_dim)
    assert out.dtype == jnp.float32
    assert jnp.allclose(out, ref, atol=1e-6, rtol=1e-6), "mismatch vs reference (small)"

    # 2) Non-multiple-of-tile case: index padding + masked ragged last output block.
    x2 = jax.random.randint(k_idx2, (3, 300), 0, n_datasets, dtype=jnp.int32)
    out2 = jax.block_until_ready(positional_embedding_trainable(x2, pe_weight))
    ref2 = jnp.take(pe_weight, x2, axis=0)
    assert out2.shape == (3, 300, hidden_dim)
    assert jnp.allclose(out2, ref2, atol=1e-6, rtol=1e-6), "mismatch vs reference (ragged)"

    # 3) Multi-tile case (grid > 1, full tiles, resident table reuse).
    x3 = jax.random.randint(k_idx3, (8, 1024), 0, n_datasets, dtype=jnp.int32)
    out3 = jax.block_until_ready(positional_embedding_trainable(x3, pe_weight))
    ref3 = jnp.take(pe_weight, x3, axis=0)
    assert out3.shape == (8, 1024, hidden_dim)
    assert jnp.allclose(out3, ref3, atol=1e-6, rtol=1e-6), "mismatch vs reference (multi-tile)"

    print("KERNEL_OK")
</pallas_src>

<mosaic_0001>
module attributes {stable_mosaic.version = 11 : i64} {
  func.func @_embedding_onehot_kernel(%arg0: i32, %arg1: memref<16x1xi32, #tpu.memory_space<vmem>>, %arg2: memref<48x128xbf16, #tpu.memory_space<vmem>>, %arg3: memref<16x128xf32, #tpu.memory_space<vmem>>) attributes {dimension_semantics = [#tpu.dimension_semantics<parallel>], iteration_bounds = array<i64: 1>, scalar_prefetch = 0 : i64, scratch_operands = 0 : i64, tpu.core_type = #tpu.core_type<tc>, window_params = [{transform_indices = @transform_0, window_bounds = array<i64: 16, 1>}, {pipeline_mode = #tpu.pipeline_mode<synchronous>, transform_indices = @transform_1, window_bounds = array<i64: 48, 128>}, {transform_indices = @transform_2, window_bounds = array<i64: 16, 128>}]} {
    %c0 = arith.constant 0 : index
    %c0_0 = arith.constant 0 : index
    %0 = vector.load %arg1[%c0, %c0_0] : memref<16x1xi32, #tpu.memory_space<vmem>>, vector<16x1xi32>
    %1 = tpu.iota {dimensions = array<i32: 1>} : vector<16x48xi32>
    %2 = vector.broadcast %0 : vector<16x1xi32> to vector<16x48xi32>
    %3 = arith.cmpi eq, %1, %2 : vector<16x48xi32>
    %c16_i32 = arith.constant 16 : i32
    %4 = vector.broadcast %c16_i32 : i32 to vector<16x1xi32>
    %5 = arith.addi %0, %4 : vector<16x1xi32>
    %6 = vector.broadcast %5 : vector<16x1xi32> to vector<16x48xi32>
    %7 = arith.cmpi eq, %1, %6 : vector<16x48xi32>
    %8 = arith.ori %3, %7 : vector<16x48xi1>
    %c32_i32 = arith.constant 32 : i32
    %9 = vector.broadcast %c32_i32 : i32 to vector<16x1xi32>
    %10 = arith.addi %0, %9 : vector<16x1xi32>
    %11 = vector.broadcast %10 : vector<16x1xi32> to vector<16x48xi32>
    %12 = arith.cmpi eq, %1, %11 : vector<16x48xi32>
    %13 = arith.ori %8, %12 : vector<16x48xi1>
    %14 = arith.extui %13 : vector<16x48xi1> to vector<16x48xi32>
    %15 = arith.sitofp %14 : vector<16x48xi32> to vector<16x48xf32>
    %16 = arith.truncf %15 : vector<16x48xf32> to vector<16x48xbf16>
    %c0_1 = arith.constant 0 : index
    %c0_2 = arith.constant 0 : index
    %17 = vector.load %arg2[%c0_1, %c0_2] : memref<48x128xbf16, #tpu.memory_space<vmem>>, vector<48x128xbf16>
    %cst = arith.constant dense<0.000000e+00> : vector<16x128xf32>
    %18 = tpu.matmul %16, %17, %cst {dimension_numbers = #tpu.dot_dimension_numbers<[1], [0], [0], [1], [0, 0, 1, 1], [], []>} : vector<16x48xbf16>, vector<48x128xbf16>, vector<16x128xf32> -> vector<16x128xf32>
    %c0_3 = arith.constant 0 : index
    %c0_4 = arith.constant 0 : index
    %19 = vector.load %arg3[%c0_3, %c0_4] : memref<16x128xf32, #tpu.memory_space<vmem>>, vector<16x128xf32>
    tpu.vector_store %arg3[%c0_3, %c0_4], %18 {strides = array<i32>} : memref<16x128xf32, #tpu.memory_space<vmem>>, vector<16x128xf32>,
    return
  }
  func.func @transform_0(%arg0: i32) -> (i32, i32) {
    %c0_i32 = arith.constant 0 : i32
    %c0_i32_0 = arith.constant 0 : i32
    return %arg0, %c0_i32 : i32, i32
  }
  func.func @transform_1(%arg0: i32) -> (i32, i32) {
    %c0_i32 = arith.constant 0 : i32
    %c0_i32_0 = arith.constant 0 : i32
    %c0_i32_1 = arith.constant 0 : i32
    return %c0_i32, %c0_i32_0 : i32, i32
  }
  func.func @transform_2(%arg0: i32) -> (i32, i32) {
    %c0_i32 = arith.constant 0 : i32
    %c0_i32_0 = arith.constant 0 : i32
    return %arg0, %c0_i32 : i32, i32
  }
}

</mosaic_0001>

<bundles_post_ra>
// kernel: positional_embedding_trainable.1
= control target key start
LH: loop header
LB: loop body
LE: loop exit
PB: predicated region body
PF: predicated region fallthrough
CT: control target
= control target key end

     0   :  { %s206_s0 = inlined_call_operand.vmem [shape: s32[16,1], index: 0, kind: input, shape index: {}]   ;;  %s207_s1 = inlined_call_operand.vmem [shape: bf16[48,128], index: 1, kind: input, shape index: {}]   ;;  %s208_s2 = inlined_call_operand.hbm [shape: f32[16,128], index: 2, kind: output, shape index: {}]  }
   0x1   :  { %v13_v0 = vld [vmem:[%s206_s0] sm:$0xff] }
   0x2   :  { %7 = vsyncpa [#allocation3], 0  ;;  %v168_v1 = vmov 0   ;;  %v25_v2 = vadd.s32 16, %v13_v0  ;;  %v37_v3 = vadd.s32 32, %v13_v0  ;;  %v14_v4 = vld [vmem:[%s206_s0 + $0x8] sm:$0xff]  ;;  %v15_v10 = vlaneseq }
   0x3   :  { %139 = vset.pattern.permute.xlu0 %v168_v1  ;;  %140 = vset.pattern.permute.xlu1 %v168_v1  ;;  %v26_v5 = vadd.s32 16, %v14_v4  ;;  %v38_v6 = vadd.s32 32, %v14_v4  ;;  %v133_v7 = vld [vmem:[%s207_s1 + $0x10] sm:$0xff]  ;;  %v132_v8 = vld [vmem:[%s207_s1 + $0x8] sm:$0xff]  ;;  %v131_v9 = vld [vmem:[%s207_s1] sm:$0xff]  ;;  %v169_v18 = vmov 0.0  }
   0x4   :  { %18 = vperm.xlu0 %139, %v13_v0   ;;  %141 = vset.pattern.permute.xlu2 %v168_v1  ;;  %v16_v12 = vand.u32 127, %v15_v10  ;;  %vm78_vm10 = vcmask 392192   ;;  %s170_s0 = smov [#allocation2]   ;;  %s104_s21 = sshll.u32 %s208_s2, 4  ;;  %s105_s21 = int_to_ptr.hbm [resolvable:$true] %s104_s21 }
   0x5   :  { %28 = vperm.xlu1 %140, %v25_v2   ;;  %40 = vperm.xlu2 %141, %v37_v3   ;;  %s102_s1 = sshll.u32 %s170_s0, 4  ;;  %s171_s22 = smov 128   ;;  %s103_s1 = int_to_ptr.vmem [resolvable:$true] %s102_s1 }
   0x6   :  { %87 = vmatpush.bf16.msra.mxu0 %v133_v7  ;;  %s172_s23 = smov 8  }
   0xa   :  { %88 = vmatpush.bf16.msra.mxu0 %v132_v8 }
   0xc   :  { %21 = vperm.xlu0 %139, %v14_v4  }
   0xd   :  { %31 = vperm.xlu1 %140, %v26_v5   ;;  %43 = vperm.xlu2 %141, %v38_v6  }
   0xe   :  { %89 = vmatpush.bf16.msra.mxu0 %v131_v9 }
  0x5f   :  { %v41_v11 = vpop.permute.xlu2 %40 }
  0x60   :  { %vm45_vm2 = vcmp.eq.s32.totalorder %v16_v12, %v41_v11 }
  0x67   :  { %v44_v15 = vpop.permute.xlu2 %43 }
  0x68   :  { %vm46_vm7 = vcmp.eq.s32.totalorder %v16_v12, %v44_v15 }
  0x76   :  { %v19_v13 = vpop.permute.xlu0 %18 }
  0x77   :  { %v29_v14 = vpop.permute.xlu1 %28  ;;  %vm23_vm0 = vcmp.eq.s32.totalorder %v16_v12, %v19_v13 }
  0x78   :  { %vm33_vm1 = vcmp.eq.s32.totalorder %v16_v12, %v29_v14 }
  0x79   :  { %vm35_vm3 = vmor %vm23_vm0, %vm33_vm1 }
  0x7a   :  { %vm47_vm5 = vmor %vm35_vm3, %vm45_vm2 }
  0x7b   :  { %v116_v19 = vsel %vm47_vm5, 1.0, %v169_v18 }
  0x7e   :  { %v22_v16 = vpop.permute.xlu0 %21 }
  0x7f   :  { %vm24_vm4 = vcmp.eq.s32.totalorder %v16_v12, %v22_v16  ;;  %v32_v17 = vpop.permute.xlu1 %31 }
  0x80   :  { %vm34_vm6 = vcmp.eq.s32.totalorder %v16_v12, %v32_v17 }
  0x81   :  { %vm36_vm8 = vmor %vm24_vm4, %vm34_vm6 }
  0x82   :  { %vm48_vm9 = vmor %vm36_vm8, %vm46_vm7 }
  0x83   :  { %v117_v20 = vsel %vm48_vm9, 1.0, %v169_v18 }
  0x84   :  { %v53_v21 = vpack.c.bf16 %v117_v20, %v116_v19 }
  0x86   :  { %130 = vmatmul.msk.bf16.vlgmr.msra.gmra.mxu0 %vm78_vm10, %v53_v21 }
 0x103   :  { %v91_v22 = vpop.f32.mrf.mxu0 }
 0x104   :  { %96 = vst [vmem:[#allocation2] sm:$0xff] %v91_v22 }
 0x10b   :  { %v93_v23 = vpop.f32.mrf.mxu0 }
 0x10c   :  { %97 = vst [vmem:[#allocation2 + $0x8] sm:$0xff] %v93_v23 }
 0x10d   :  { %110 = dma.vmem_to_hbm [thread:$0]  %s103_s1, 256, %s105_s21, [#allocation3], %s171_s22, %s171_s22, %s172_s23  }
 0x10e   :  { %166 = dma.done.wait [#allocation3], 256  }
 0x10f   :  { %167 = vsyncadd [#allocation3], 4294967040 }
 0x110   :  { %115 = vsyncpa [#allocation3], 1 }

</bundles_post_ra>
